<compile_context>
chip_gen: v5e
topology: v5e:2x2
jax: 0.10.0
libtpu: 0.0.40
codegen_flags: <defaults>
</compile_context>

<pallas_src>
import functools

import jax
import jax.numpy as jnp
from jax import lax
from jax.experimental import pallas as pl
from jax.experimental.pallas import tpu as pltpu


# ---------------------------------------------------------------------------
# Hardware probing + small helpers
# ---------------------------------------------------------------------------
def _vmem_limit_bytes():
    """Scoped-VMEM limit: ~75% of physical capacity, conservative fallback (v7x)."""
    phys = 64 * 1024 * 1024  # smallest per-core physical VMEM across generations
    try:
        info = pltpu.get_tpu_info()
        cap = getattr(info, "vmem_capacity_bytes", None)
        if cap:
            phys = int(cap)
    except Exception:
        pass
    return min(int(phys * 3 // 4), 100 * 1024 * 1024)


def _num_tensorcores():
    """Best-effort TensorCore-per-chip count (2 on v7x); default 1 if unknown."""
    try:
        info = pltpu.get_tpu_info()
        for name in ("num_cores", "num_tensorcores", "tensorcores_per_chip",
                     "cores_per_chip"):
            v = getattr(info, name, None)
            if v:
                return int(v)
    except Exception:
        pass
    try:
        dev = jax.devices()[0]
        for name in ("num_cores", "core_count"):
            v = getattr(dev, name, None)
            if v:
                return int(v)
    except Exception:
        pass
    return 1


def _sublane_align(dtype):
    # Sub-32-bit dtypes pack along sublanes: 8 for f32, 16 for bf16, 32 for int8/fp8.
    return max(8, 32 // jnp.dtype(dtype).itemsize)


def _round_down(x, m):
    return (x // m) * m


def _round_up(x, m):
    return ((x + m - 1) // m) * m


def _maybe_buffered_spec(block_shape, index_map, n_steps):
    """3-deep pipelined BlockSpec for streamed inputs (falls back to default)."""
    if n_steps >= 3 and hasattr(pl, "Buffered"):
        try:
            return pl.BlockSpec(block_shape, index_map, pipeline_mode=pl.Buffered(3))
        except TypeError:
            pass
    return pl.BlockSpec(block_shape, index_map)


# ---------------------------------------------------------------------------
# Kernel 1: msk is None -> mean over axis 1 (streamed sum + single final scale)
# ---------------------------------------------------------------------------
def _mean_kernel(seq_ref, out_ref, acc_ref, *, inv_n, n_total, tile_n, mask_n):
    k = pl.program_id(2)  # reduction axis over N (last grid axis)

    @pl.when(k == 0)
    def _():
        acc_ref[...] = jnp.zeros_like(acc_ref)

    x = seq_ref[...]
    if mask_n:
        # Last reduction block may extend past N: zero the out-of-range rows.
        row = lax.broadcasted_iota(jnp.int32, x.shape, 1)
        x = jnp.where(k * tile_n + row < n_total, x, jnp.zeros_like(x))
    # Per-tile f32 accumulation (sublane reduce), resident across the N axis.
    acc_ref[...] += jnp.sum(x, axis=1, dtype=jnp.float32)

    @pl.when(k == pl.num_programs(2) - 1)
    def _():
        # Scale once by 1/N_total (not 1/tile_N).
        out_ref[...] = (acc_ref[...] * inv_n).astype(out_ref.dtype)


def _mean_tiles(B, N, F, dtype, vmem_limit, cores):
    itemsize = jnp.dtype(dtype).itemsize
    sub = _sublane_align(dtype)
    budget = int(vmem_limit * 0.6)
    n_buf_in = 3  # streamed input is (up to) triple-buffered

    tF = F                       # full lane extent -> contiguous DMA rows
    tB = B if B <= 128 else 128  # output sublane dim (multiple of 8 when < B)

    def n_cap(tB_, tF_):
        fixed = tB_ * tF_ * 4 + 2 * tB_ * tF_ * itemsize  # f32 acc + 2x output block
        avail = budget - fixed
        if avail <= 0:
            return 0
        return avail // (n_buf_in * tB_ * tF_ * itemsize)

    # Joint VMEM budget: shrink tF (128-multiples) first, then tB, until tN fits.
    while n_cap(tB, tF) < min(N, sub):
        if tF > 128:
            tF = max(128, _round_down(tF // 2, 128))
        elif tB > sub:
            tB = max(sub, _round_down(tB // 2, sub))
        else:
            break

    cap = n_cap(tB, tF)
    if cap >= N:
        tN = N
    else:
        tN = min(max(sub, _round_down(int(cap), sub)), N)

    # v7x (2 TensorCores): make sure the parallel (B, F) grid has >= 2 blocks.
    if cores >= 2 and pl.cdiv(B, tB) * pl.cdiv(F, tF) == 1:
        if F >= 256:
            tF = _round_up(F // 2, 128)
        elif B >= 2 * sub:
            tB = _round_up(B // 2, sub)

    return tB, tN, tF


def _mean_readout(seq, *, force_tiles=None):
    B, N, F = seq.shape
    vmem_limit = _vmem_limit_bytes()
    cores = _num_tensorcores()
    if force_tiles is not None:
        tB, tN, tF = force_tiles
    else:
        tB, tN, tF = _mean_tiles(B, N, F, seq.dtype, vmem_limit, cores)

    grid = (pl.cdiv(B, tB), pl.cdiv(F, tF), pl.cdiv(N, tN))
    mask_n = (N % tN) != 0

    itemsize = jnp.dtype(seq.dtype).itemsize
    cost = pl.CostEstimate(
        flops=B * N * F + B * F,
        transcendentals=0,
        bytes_accessed=B * N * F * itemsize + B * F * itemsize,
    )

    kernel = functools.partial(
        _mean_kernel, inv_n=float(1.0 / N), n_total=N, tile_n=tN, mask_n=mask_n
    )
    return pl.pallas_call(
        kernel,
        out_shape=jax.ShapeDtypeStruct((B, F), seq.dtype),
        grid_spec=pltpu.PrefetchScalarGridSpec(
            num_scalar_prefetch=0,
            grid=grid,
            in_specs=[
                _maybe_buffered_spec((tB, tN, tF), lambda b, j, k: (b, k, j), grid[2])
            ],
            # Same output block across the N axis -> resident across the reduction.
            out_specs=pl.BlockSpec((tB, tF), lambda b, j, k: (b, j)),
            scratch_shapes=[pltpu.VMEM((tB, tF), jnp.float32)],
        ),
        compiler_params=pltpu.CompilerParams(
            dimension_semantics=("parallel", "parallel", "arbitrary"),
            vmem_limit_bytes=vmem_limit,
        ),
        cost_estimate=cost,
    )(seq)


# ---------------------------------------------------------------------------
# Kernel 2: mask path -> msk @ squeeze(seq)   (tiled MXU matmul)
# ---------------------------------------------------------------------------
def _mask_k_operands(a, b, k, tile_k, n_total):
    # Zero the out-of-range K extent of BOTH operands (OOB reads are undefined;
    # 0 * garbage could be NaN, so both sides must be zeroed).
    col = lax.broadcasted_iota(jnp.int32, a.shape, 1)
    a = jnp.where(k * tile_k + col < n_total, a, jnp.zeros_like(a))
    row = lax.broadcasted_iota(jnp.int32, b.shape, 0)
    b = jnp.where(k * tile_k + row < n_total, b, jnp.zeros_like(b))
    return a, b


def _matmul_kernel_f32out(msk_ref, seq_ref, out_ref, *, mask_k, n_total, tile_k):
    # f32 output: accumulate directly into the resident output block (no scratch).
    k = pl.program_id(2)

    @pl.when(k == 0)
    def _():
        out_ref[...] = jnp.zeros_like(out_ref)

    a = msk_ref[...]
    b = seq_ref[...]
    if mask_k:
        a, b = _mask_k_operands(a, b, k, tile_k, n_total)
    out_ref[...] += jnp.dot(a, b, preferred_element_type=jnp.float32)


def _matmul_kernel_scratch(msk_ref, seq_ref, out_ref, acc_ref, *, mask_k, n_total,
                           tile_k):
    # Narrow output dtype: f32 VMEM accumulator, cast-store on the last K step.
    k = pl.program_id(2)

    @pl.when(k == 0)
    def _():
        acc_ref[...] = jnp.zeros_like(acc_ref)

    a = msk_ref[...]
    b = seq_ref[...]
    if mask_k:
        a, b = _mask_k_operands(a, b, k, tile_k, n_total)
    acc_ref[...] += jnp.dot(a, b, preferred_element_type=jnp.float32)

    @pl.when(k == pl.num_programs(2) - 1)
    def _():
        out_ref[...] = acc_ref[...].astype(out_ref.dtype)


def _matmul_tiles(M, N, F, lhs_dtype, rhs_dtype, out_dtype, vmem_limit, cores):
    li = jnp.dtype(lhs_dtype).itemsize
    ri = jnp.dtype(rhs_dtype).itemsize
    oi = jnp.dtype(out_dtype).itemsize
    sub_l = _sublane_align(lhs_dtype)
    use_scratch = jnp.dtype(out_dtype) != jnp.dtype(jnp.float32)
    budget = int(vmem_limit * 0.6)

    tm = M if M <= 256 else 256      # output rows per block
    tn = F if F <= 1024 else 1024    # lane-dense output width (full F preferred)

    def k_cap(tm_, tn_):
        fixed = 2 * tm_ * tn_ * oi
        if use_scratch:
            fixed += tm_ * tn_ * 4
        avail = budget - fixed
        per_k = 2 * tm_ * li + 3 * tn_ * ri   # 2x lhs buffers, up to 3x rhs buffers
        if avail <= 0:
            return 0
        return avail // per_k

    # Joint VMEM budget: shrink tn (128-multiples) first, then tm.
    while k_cap(tm, tn) < min(N, 128):
        if tn > 128:
            tn = max(128, _round_down(tn // 2, 128))
        elif tm > sub_l:
            tm = max(sub_l, _round_down(tm // 2, sub_l))
        else:
            break

    cap = k_cap(tm, tn)
    tk_cap = max(int(cap), 128)
    if N <= tk_cap or N <= 128:
        tk = N                                   # single K step, full extent
    else:
        tk = _round_down(min(tk_cap, 2048), 128)  # big, 128-multiple K tile

    # v7x (2 TensorCores): keep the parallel (M, F) grid >= 2 blocks.
    if cores >= 2 and pl.cdiv(M, tm) * pl.cdiv(F, tn) == 1:
        if F >= 256:
            tn = _round_up(F // 2, 128)
        elif M >= 2 * sub_l:
            tm = _round_up(M // 2, sub_l)

    return tm, tn, tk, use_scratch


def _masked_readout(msk, seq2d, *, force_tiles=None):
    M, N = msk.shape
    N2, F = seq2d.shape
    assert N == N2, f"mask inner dim {N} != seq nodes dim {N2}"
    out_dtype = jnp.result_type(msk.dtype, seq2d.dtype)

    vmem_limit = _vmem_limit_bytes()
    cores = _num_tensorcores()
    if force_tiles is not None:
        tm, tn, tk = force_tiles
        use_scratch = jnp.dtype(out_dtype) != jnp.dtype(jnp.float32)
    else:
        tm, tn, tk, use_scratch = _matmul_tiles(
            M, N, F, msk.dtype, seq2d.dtype, out_dtype, vmem_limit, cores)

    grid = (pl.cdiv(M, tm), pl.cdiv(F, tn), pl.cdiv(N, tk))
    mask_k = (N % tk) != 0

    cost = pl.CostEstimate(
        flops=2 * M * N * F,
        transcendentals=0,
        bytes_accessed=(M * N * jnp.dtype(msk.dtype).itemsize
                        + N * F * jnp.dtype(seq2d.dtype).itemsize
                        + M * F * jnp.dtype(out_dtype).itemsize),
    )

    in_specs = [
        pl.BlockSpec((tm, tk), lambda i, j, k: (i, k)),
        _maybe_buffered_spec((tk, tn), lambda i, j, k: (k, j), grid[2]),
    ]
    out_spec = pl.BlockSpec((tm, tn), lambda i, j, k: (i, j))

    if use_scratch:
        kernel = functools.partial(
            _matmul_kernel_scratch, mask_k=mask_k, n_total=N, tile_k=tk)
        scratch = [pltpu.VMEM((tm, tn), jnp.float32)]
    else:
        kernel = functools.partial(
            _matmul_kernel_f32out, mask_k=mask_k, n_total=N, tile_k=tk)
        scratch = []

    return pl.pallas_call(
        kernel,
        out_shape=jax.ShapeDtypeStruct((M, F), out_dtype),
        grid_spec=pltpu.PrefetchScalarGridSpec(
            num_scalar_prefetch=0,
            grid=grid,
            in_specs=in_specs,
            out_specs=out_spec,
            scratch_shapes=scratch,
        ),
        compiler_params=pltpu.CompilerParams(
            dimension_semantics=("parallel", "parallel", "arbitrary"),
            vmem_limit_bytes=vmem_limit,
        ),
        cost_estimate=cost,
    )(msk, seq2d)


# ---------------------------------------------------------------------------
# Module-equivalent wrapper
# ---------------------------------------------------------------------------
def avg_readout2(seq, msk=None):
    """JAX/Pallas equivalent of AvgReadout2.forward(seq, msk)."""
    if msk is None:
        # TODO(synk): only rank-3 (B, N, F) seq is handled for the mean path.
        assert seq.ndim == 3, f"expected (B, N, F) seq, got {seq.shape}"
        return _mean_readout(seq)
    # torch.squeeze(seq): drops ALL size-1 dims (matches reference semantics).
    seq_sq = jnp.squeeze(seq)
    # TODO(synk): torch.matmul broadcasting for non-2-D squeezed seq (batched /
    # mat-vec) is not covered by the 2-D Pallas matmul path.
    assert seq_sq.ndim == 2, f"expected 2-D seq after squeeze, got {seq_sq.shape}"
    return _masked_readout(msk, seq_sq)


if __name__ == "__main__":
    key = jax.random.PRNGKey(0)
    k1, k2, k3, k4, k5, k6, k7, k8 = jax.random.split(key, 8)

    # --- Path 1 (small): msk is None (mean over dim 1) ---
    B, N, F = 2, 8, 32
    seq = jax.random.normal(k1, (B, N, F), dtype=jnp.float32)
    out_mean = avg_readout2(seq, None)
    jax.block_until_ready(out_mean)
    ref_mean = jnp.mean(seq, axis=1)
    assert out_mean.shape == (B, F)
    assert jnp.allclose(out_mean, ref_mean, atol=1e-5, rtol=1e-4)

    # --- Path 2 (small): msk provided (matmul(msk, squeeze(seq))) ---
    M = 4
    seq2 = jax.random.normal(k2, (1, N, F), dtype=jnp.float32)  # squeezes to (N, F)
    msk = jax.random.normal(k3, (M, N), dtype=jnp.float32)
    out_mm = avg_readout2(seq2, msk)
    jax.block_until_ready(out_mm)
    ref_mm = jnp.matmul(msk, jnp.squeeze(seq2))
    assert out_mm.shape == (M, F)
    assert jnp.allclose(out_mm, ref_mm, atol=1e-4, rtol=1e-4)

    # --- Path 1 (tiled): exercises the N-reduction grid axis + accumulator ---
    B2, N2, F2 = 2, 1024, 256
    seq_big = jax.random.normal(k4, (B2, N2, F2), dtype=jnp.float32)
    out_mean_big = avg_readout2(seq_big, None)
    jax.block_until_ready(out_mean_big)
    ref_mean_big = jnp.mean(seq_big, axis=1)
    assert out_mean_big.shape == (B2, F2)
    assert jnp.allclose(out_mean_big, ref_mean_big, atol=1e-5, rtol=1e-4)

    # --- Path 2 (tiled): exercises the K-loop accumulator on the MXU ---
    M2 = 256
    seq_big2 = jax.random.normal(k5, (1, N2, F2), dtype=jnp.float32)
    msk_big = jax.random.normal(k6, (M2, N2), dtype=jnp.float32)
    out_mm_big = avg_readout2(seq_big2, msk_big)
    jax.block_until_ready(out_mm_big)
    ref_mm_big = jnp.matmul(msk_big, jnp.squeeze(seq_big2))
    assert out_mm_big.shape == (M2, F2)
    assert jnp.allclose(out_mm_big, ref_mm_big, atol=1e-3, rtol=1e-3)

    # --- Path 1 (non-divisible N): forces the cdiv grid + in-kernel mask path ---
    Nr = 200
    seq_rem = jax.random.normal(k7, (2, Nr, 128), dtype=jnp.float32)
    out_mean_rem = _mean_readout(seq_rem, force_tiles=(2, 64, 128))  # 200 % 64 != 0
    jax.block_until_ready(out_mean_rem)
    ref_mean_rem = jnp.mean(seq_rem, axis=1)
    assert jnp.allclose(out_mean_rem, ref_mean_rem, atol=1e-5, rtol=1e-4)

    # --- Path 2 (non-divisible K): forces the masked K-remainder matmul path ---
    seq_rem2 = jax.random.normal(k8, (Nr, 128), dtype=jnp.float32)
    msk_rem = jax.random.normal(k3, (8, Nr), dtype=jnp.float32)
    out_mm_rem = _masked_readout(msk_rem, seq_rem2, force_tiles=(8, 128, 128))
    jax.block_until_ready(out_mm_rem)
    ref_mm_rem = jnp.matmul(msk_rem, seq_rem2)
    assert jnp.allclose(out_mm_rem, ref_mm_rem, atol=1e-3, rtol=1e-3)

    print("KERNEL_OK")
</pallas_src>

<mosaic_0001>
module attributes {stable_mosaic.version = 11 : i64} {
  func.func @_mean_kernel(%arg0: i32, %arg1: i32, %arg2: i32, %arg3: memref<2x8x32xf32, #tpu.memory_space<vmem>>, %arg4: memref<2x32xf32, #tpu.memory_space<vmem>>, %arg5: memref<2x32xf32, #tpu.memory_space<vmem>>) attributes {dimension_semantics = [#tpu.dimension_semantics<parallel>, #tpu.dimension_semantics<parallel>, #tpu.dimension_semantics<arbitrary>], iteration_bounds = array<i64: 1, 1, 1>, scalar_prefetch = 0 : i64, scratch_operands = 1 : i64, tpu.core_type = #tpu.core_type<tc>, window_params = [{transform_indices = @transform_0, window_bounds = array<i64: 2, 8, 32>}, {transform_indices = @transform_1, window_bounds = array<i64: 2, 32>}]} {
    %c0_i32 = arith.constant 0 : i32
    %0 = arith.cmpi eq, %arg2, %c0_i32 : i32
    %1 = arith.extui %0 : i1 to i32
    %c0_i32_0 = arith.constant 0 : i32
    %2 = arith.cmpi ne, %1, %c0_i32_0 : i32
    scf.if %2 {
      %cst_9 = arith.constant 0.000000e+00 : f32
      %11 = vector.broadcast %cst_9 : f32 to vector<2x32xf32>
      %c0_10 = arith.constant 0 : index
      %c0_11 = arith.constant 0 : index
      %12 = vector.load %arg5[%c0_10, %c0_11] : memref<2x32xf32, #tpu.memory_space<vmem>>, vector<2x32xf32>
      tpu.vector_store %arg5[%c0_10, %c0_11], %11 {strides = array<i32>} : memref<2x32xf32, #tpu.memory_space<vmem>>, vector<2x32xf32>,
    } else {
    }
    %c0 = arith.constant 0 : index
    %c0_1 = arith.constant 0 : index
    %c0_2 = arith.constant 0 : index
    %3 = vector.load %arg3[%c0, %c0_1, %c0_2] : memref<2x8x32xf32, #tpu.memory_space<vmem>>, vector<2x8x32xf32>
    %c0_3 = arith.constant 0 : index
    %c0_4 = arith.constant 0 : index
    %4 = vector.load %arg5[%c0_3, %c0_4] : memref<2x32xf32, #tpu.memory_space<vmem>>, vector<2x32xf32>
    %cst = arith.constant dense<0.000000e+00> : vector<2x32xf32>
    %5 = vector.multi_reduction <add>, %3, %cst [1] : vector<2x8x32xf32> to vector<2x32xf32>
    %6 = arith.addf %4, %5 : vector<2x32xf32>
    %c0_5 = arith.constant 0 : index
    %c0_6 = arith.constant 0 : index
    %7 = vector.load %arg5[%c0_5, %c0_6] : memref<2x32xf32, #tpu.memory_space<vmem>>, vector<2x32xf32>
    tpu.vector_store %arg5[%c0_5, %c0_6], %6 {strides = array<i32>} : memref<2x32xf32, #tpu.memory_space<vmem>>, vector<2x32xf32>,
    %c0_i32_7 = arith.constant 0 : i32
    %8 = arith.cmpi eq, %arg2, %c0_i32_7 : i32
    %9 = arith.extui %8 : i1 to i32
    %c0_i32_8 = arith.constant 0 : i32
    %10 = arith.cmpi ne, %9, %c0_i32_8 : i32
    scf.if %10 {
      %c0_9 = arith.constant 0 : index
      %c0_10 = arith.constant 0 : index
      %11 = vector.load %arg5[%c0_9, %c0_10] : memref<2x32xf32, #tpu.memory_space<vmem>>, vector<2x32xf32>
      %cst_11 = arith.constant 1.250000e-01 : f32
      %12 = vector.broadcast %cst_11 : f32 to vector<2x32xf32>
      %13 = arith.mulf %11, %12 : vector<2x32xf32>
      %c0_12 = arith.constant 0 : index
      %c0_13 = arith.constant 0 : index
      %14 = vector.load %arg4[%c0_12, %c0_13] : memref<2x32xf32, #tpu.memory_space<vmem>>, vector<2x32xf32>
      tpu.vector_store %arg4[%c0_12, %c0_13], %13 {strides = array<i32>} : memref<2x32xf32, #tpu.memory_space<vmem>>, vector<2x32xf32>,
    } else {
    }
    return
  }
  func.func @transform_0(%arg0: i32, %arg1: i32, %arg2: i32) -> (i32, i32, i32) {
    %c0_i32 = arith.constant 0 : i32
    return %arg0, %arg2, %arg1 : i32, i32, i32
  }
  func.func @transform_1(%arg0: i32, %arg1: i32, %arg2: i32) -> (i32, i32) {
    %c0_i32 = arith.constant 0 : i32
    return %arg0, %arg1 : i32, i32
  }
}

</mosaic_0001>

<bundles_post_ra>
// kernel: tpu_custom_call.1
= control target key start
LH: loop header
LB: loop body
LE: loop exit
PB: predicated region body
PF: predicated region fallthrough
CT: control target
= control target key end

     0   :  { %6 = vsyncpa [#allocation4], 0  ;;  %s161_s0 = inlined_call_operand.hbm [shape: f32[2,8,32], index: 0, kind: input, shape index: {}]   ;;  %s162_s1 = inlined_call_operand.hbm [shape: f32[2,32], index: 1, kind: output, shape index: {}]  }
   0x1   :  { %7 = vsyncpa [#allocation5], 0  ;;  %s12_s8 = sshll.u32 %s161_s0, 4  ;;  %s137_s9 = smov [#allocation3]   ;;  %s13_s8 = int_to_ptr.hbm [resolvable:$true] %s12_s8 }
   0x2   :  { %s14_s10 = sshll.u32 %s137_s9, 4  ;;  %s138_s11 = smov 128   ;;  %s15_s10 = int_to_ptr.vmem [resolvable:$true] %s14_s10 }
   0x3   :  { %s139_s12 = smov 8  }
   0x4   :  { %20 = dma.hbm_to_vmem [thread:$0]  %s13_s8, 256, %s15_s10, [#allocation4], %s138_s11, %s138_s11, %s139_s12  }
   0x5   :  { %133 = dma.done.wait [#allocation4], 256  }
   0x6   :  { %134 = vsyncadd [#allocation4], 4294967040  ;;  %vm29_vm0 = vcmask 254976   ;;  %v140_v0 = vmov 0.0   ;;  %vm34_vm1 = vcmask 261120   ;;  %v31_v1 = vld [vmem:[#allocation3] sm:$0xff] }
   0x7   :  { %30 = vst.msk [vmem:[#allocation2] sm:$0x3] %vm29_vm0, %v140_v0  ;;  %v32_v2 = vld [vmem:[#allocation3 + $0x8] sm:$0xff]  ;;  %v35_v3 = vsel %vm34_vm1, %v31_v1, 0.0  ;;  %vm51_vm2 = vcmask 1041409   ;;  %s141_s0 = smov [#allocation6]  }
   0x8   :  { %v42_v4 = vsel %vm34_vm1, %v32_v2, 0.0  ;;  %v36_v5 = vrot.slane %v35_v3, 4  ;;  %s68_s13 = sshll.u32 %s141_s0, 4  ;;  %s70_s16 = sshll.u32 %s162_s1, 4  ;;  %s69_s13 = int_to_ptr.vmem [resolvable:$true] %s68_s13  ;;  %s71_s16 = int_to_ptr.hbm [resolvable:$true] %s70_s16 }
   0x9   :  { %v43_v6 = vrot.slane %v42_v4, 4 }
   0xa   :  { %v37_v7 = vadd.f32 %v36_v5, %v35_v3 }
   0xb   :  { %v44_v8 = vadd.f32 %v43_v6, %v42_v4 }
   0xc   :  { %v38_v9 = vrot.slane %v37_v7, 2 }
   0xd   :  { %v45_v10 = vrot.slane %v44_v8, 2 }
   0xe   :  { %v39_v11 = vadd.f32 %v38_v9, %v37_v7  ;;  %v33_v15 = vld [vmem:[#allocation2] sm:$0x3] }
   0xf   :  { %v46_v12 = vadd.f32 %v45_v10, %v44_v8 }
  0x10   :  { %v40_v13 = vrot.slane %v39_v11, 1 }
  0x11   :  { %v47_v14 = vrot.slane %v46_v12, 1 }
  0x12   :  { %v41_v16 = vadd.f32 %v40_v13, %v39_v11 }
  0x13   :  { %v48_v17 = vadd.f32 %v47_v14, %v46_v12 }
  0x15   :  { %v52_v18 = vsel %vm51_vm2, %v48_v17, %v41_v16 }
  0x16   :  { %v54_v19 = vadd.f32 %v52_v18, %v33_v15 }
  0x18   :  { %56 = vst.msk [vmem:[#allocation2] sm:$0x3] %vm29_vm0, %v54_v19 }
  0x1f   :  { %v60_v20 = vld [vmem:[#allocation2] sm:$0x3] }
  0x20   :  { %v61_v21 = vmul.f32 0.125, %v60_v20 }
  0x22   :  { %62 = vst.msk [vmem:[#allocation6] sm:$0x3] %vm29_vm0, %v61_v21 }
  0x23   :  { %73 = dma.vmem_to_hbm [thread:$0]  %s69_s13, 32, %s71_s16, [#allocation5]  }
  0x24   :  { %135 = dma.done.wait [#allocation5], 32  }
  0x25   :  { %136 = vsyncadd [#allocation5], 4294967264 }
  0x26   :  { %78 = vsyncpa [#allocation4], 1 }
  0x27   :  { %79 = vsyncpa [#allocation5], 1 }

</bundles_post_ra>
